<compile_context>
chip_gen: v5e
topology: v5e:2x2
jax: 0.10.0
libtpu: 0.0.40
codegen_flags: <defaults>
</compile_context>

<pallas_src>
import numpy as np
import jax
import jax.numpy as jnp
from jax.experimental import pallas as pl
from jax.experimental.pallas import tpu as pltpu


def fused_affine_relu_kernel(x_ref, w_ref, b_ref, o_ref):
    # x_ref: (TM, C*V)   rows are (n, t), cols are (c, v)      -- lane-dense
    # w_ref: (C*V, C*W)  fused conv + pooling + BN-scale + residual weight
    # b_ref: (1, C*W)    fused conv-bias (through pooling) + BN-shift
    # o_ref: (TM, C*W)
    acc = jnp.dot(x_ref[...], w_ref[...], preferred_element_type=jnp.float32)
    o_ref[...] = jnp.maximum(acc + b_ref[...], 0.0).astype(o_ref.dtype)


def _choose_row_tile(m):
    """Largest row tile (multiple of 8, dividing m) up to 512, preferring >=2 grid steps."""
    if m % 8 != 0:
        return m                       # full block (equals the full array dim)
    tm = min(m, 512)
    while m % tm != 0:
        tm -= 8
    if m // tm == 1 and m >= 16 and (m // 2) % 8 == 0:
        tm = m // 2                    # split so both v7x TensorCores get a step
    return tm


def fuse_graph_pooling_params(conv_w, conv_b, pool_A, bn_scale, bn_shift,
                              residual_node, C, V):
    """Fold 1x1-conv, pooling adjacency, eval BN and the residual gather into one
    (C*V, C*W) weight and one (1, C*W) bias (parameter-time precompute)."""
    K, _, W = pool_A.shape
    w4 = conv_w.reshape(K, C, C)                               # w4[k, c_out, c_in]
    # M[c_in, v, c_out, w] = sum_k w4[k, c_out, c_in] * A[k, v, w]
    M = jnp.einsum('kpc,kvw->cvpw', w4, pool_A)
    M = M * bn_scale[None, None, :, None]                      # fold BN scale over c_out
    # Residual gather x[:, c', :, residual_node[w]] expressed as an identity-like map.
    R = np.zeros((C, V, C, W), np.float32)
    c_idx = np.arange(C)
    for w_i, v_i in enumerate(np.asarray(residual_node)):
        R[c_idx, int(v_i), c_idx, w_i] = 1.0
    W_total = (M + jnp.asarray(R)).reshape(C * V, C * W)
    # Conv bias propagated through pooling, then BN.
    b2 = conv_b.reshape(K, C)                                  # b2[k, c_out]
    col_sum = pool_A.sum(axis=1)                               # (K, W) = sum_v A[k, v, w]
    b_eff = jnp.einsum('kp,kw->pw', b2, col_sum)               # (C, W)
    B_total = (b_eff * bn_scale[:, None] + bn_shift[:, None]).reshape(1, C * W)
    return W_total, B_total


def graph_pooling_forward(x, w_total, b_total, out_nodes):
    """x: (N, C, T, V) float32, fused params from fuse_graph_pooling_params.
    Returns (N, C, T, W)."""
    N, C, T, V = x.shape
    W = out_nodes
    CV = C * V
    CW = C * W
    assert w_total.shape == (CV, CW) and b_total.shape == (1, CW)

    rows = N * T
    # Layout plumbing (glue): lane-dense rows (n,t) x (c,v).
    x2d = x.transpose(0, 2, 1, 3).reshape(rows, CV)
    tm = _choose_row_tile(rows)
    grid = (rows // tm,)

    cost = pl.CostEstimate(
        flops=2 * rows * CV * CW,
        transcendentals=0,
        bytes_accessed=4 * (rows * CV + CV * CW + CW + rows * CW),
    )

    out2d = pl.pallas_call(
        fused_affine_relu_kernel,
        out_shape=jax.ShapeDtypeStruct((rows, CW), x.dtype),
        grid_spec=pltpu.PrefetchScalarGridSpec(
            num_scalar_prefetch=0,
            grid=grid,
            in_specs=[
                pl.BlockSpec((tm, CV), lambda i: (i, 0)),   # x rows (streamed)
                pl.BlockSpec((CV, CW), lambda i: (0, 0)),   # fused weight (VMEM-resident)
                pl.BlockSpec((1, CW), lambda i: (0, 0)),    # fused bias (VMEM-resident)
            ],
            out_specs=pl.BlockSpec((tm, CW), lambda i: (i, 0)),
        ),
        compiler_params=pltpu.CompilerParams(
            dimension_semantics=("parallel",)),
        cost_estimate=cost,
    )(x2d, w_total, b_total)

    # Layout plumbing back to the module's NCHW output.
    return out2d.reshape(N, T, C, W).transpose(0, 2, 1, 3)


def reference_forward(x, conv_w, conv_b, pool_A, bn_scale, bn_shift, residual_node):
    N, C, T, V = x.shape
    K = pool_A.shape[0]
    res = x[:, :, :, jnp.asarray(residual_node, dtype=jnp.int32)]
    y = jnp.einsum('oc,nctv->notv', conv_w, x) + conv_b[None, :, None, None]
    y = y.reshape(N, K, C, T, V)
    z = jnp.einsum('nkctv,kvw->nctw', y, pool_A)
    z = z * bn_scale[None, :, None, None] + bn_shift[None, :, None, None]
    return jnp.maximum(res + z, 0.0)


if __name__ == "__main__":
    key = jax.random.PRNGKey(0)

    # Small shapes consistent with the module's forward
    N, C, T, V, K = 2, 4, 16, 16, 3

    # Synthetic remain_node lists (replicating __init__ index logic)
    remain_node = [
        list(range(V)),
        [0, 2, 3, 5, 6, 8, 9, 11, 12, 13, 14, 15],   # keep 12 of 16 nodes
    ]
    pooling_time = 1
    prev = remain_node[pooling_time - 1]
    cur = set(remain_node[pooling_time])
    pool_node = [idx for idx, node in enumerate(prev) if node not in cur]
    residual_node = [idx for idx, node in enumerate(prev) if node in cur]
    W = len(residual_node)

    keys = jax.random.split(key, 8)
    x = jax.random.normal(keys[0], (N, C, T, V), dtype=jnp.float32)
    A = jax.random.normal(keys[1], (K, V, V), dtype=jnp.float32) * 0.1
    # pooling_matrix = np.delete(A, pool_node, axis=2)  == keep residual columns
    pool_A = A[:, :, jnp.asarray(residual_node, dtype=jnp.int32)]          # (K, V, W)

    # Conv2d(C, K*C, 1) params, weight (K*C, C, 1, 1) squeezed to (K*C, C)
    conv_w = jax.random.normal(keys[2], (K * C, C), dtype=jnp.float32) * 0.2
    conv_b = jax.random.normal(keys[3], (K * C,), dtype=jnp.float32) * 0.1

    # BatchNorm2d(C), eval-mode params folded into scale/shift
    gamma = 1.0 + 0.1 * jax.random.normal(keys[4], (C,), dtype=jnp.float32)
    beta = 0.1 * jax.random.normal(keys[5], (C,), dtype=jnp.float32)
    running_mean = 0.1 * jax.random.normal(keys[6], (C,), dtype=jnp.float32)
    running_var = jnp.abs(jax.random.normal(keys[7], (C,), dtype=jnp.float32)) + 0.5
    eps = 1e-5
    bn_scale = gamma / jnp.sqrt(running_var + eps)
    bn_shift = beta - running_mean * bn_scale

    # Parameter-time fusion of conv + pooling + BN + residual.
    W_total, B_total = fuse_graph_pooling_params(
        conv_w, conv_b, pool_A, bn_scale, bn_shift, residual_node, C, V)
    W_total = jax.block_until_ready(W_total)
    B_total = jax.block_until_ready(B_total)

    out = graph_pooling_forward(x, W_total, B_total, W)
    out = jax.block_until_ready(out)

    ref = reference_forward(x, conv_w, conv_b, pool_A, bn_scale, bn_shift, residual_node)
    ref = jax.block_until_ready(ref)

    assert out.shape == (N, C, T, W), out.shape
    np.testing.assert_allclose(np.asarray(out), np.asarray(ref), rtol=1e-4, atol=1e-5)
    print("KERNEL_OK")
</pallas_src>

<mosaic_0001>
module attributes {stable_mosaic.version = 11 : i64} {
  func.func @fused_affine_relu_kernel(%arg0: i32, %arg1: memref<16x64xf32, #tpu.memory_space<vmem>>, %arg2: memref<64x48xf32, #tpu.memory_space<vmem>>, %arg3: memref<1x48xf32, #tpu.memory_space<vmem>>, %arg4: memref<16x48xf32, #tpu.memory_space<vmem>>) attributes {dimension_semantics = [#tpu.dimension_semantics<parallel>], iteration_bounds = array<i64: 2>, scalar_prefetch = 0 : i64, scratch_operands = 0 : i64, tpu.core_type = #tpu.core_type<tc>, window_params = [{transform_indices = @transform_0, window_bounds = array<i64: 16, 64>}, {pipeline_mode = #tpu.pipeline_mode<synchronous>, transform_indices = @transform_1, window_bounds = array<i64: 64, 48>}, {pipeline_mode = #tpu.pipeline_mode<synchronous>, transform_indices = @transform_2, window_bounds = array<i64: 1, 48>}, {transform_indices = @transform_3, window_bounds = array<i64: 16, 48>}]} {
    %c0 = arith.constant 0 : index
    %c0_0 = arith.constant 0 : index
    %0 = vector.load %arg1[%c0, %c0_0] : memref<16x64xf32, #tpu.memory_space<vmem>>, vector<16x64xf32>
    %c0_1 = arith.constant 0 : index
    %c0_2 = arith.constant 0 : index
    %1 = vector.load %arg2[%c0_1, %c0_2] : memref<64x48xf32, #tpu.memory_space<vmem>>, vector<64x48xf32>
    %cst = arith.constant dense<0.000000e+00> : vector<16x48xf32>
    %2 = tpu.matmul %0, %1, %cst {dimension_numbers = #tpu.dot_dimension_numbers<[1], [0], [0], [1], [0, 0, 1, 1], [], []>} : vector<16x64xf32>, vector<64x48xf32>, vector<16x48xf32> -> vector<16x48xf32>
    %c0_3 = arith.constant 0 : index
    %c0_4 = arith.constant 0 : index
    %3 = vector.load %arg3[%c0_3, %c0_4] : memref<1x48xf32, #tpu.memory_space<vmem>>, vector<1x48xf32>
    %4 = vector.broadcast %3 : vector<1x48xf32> to vector<16x48xf32>
    %5 = arith.addf %2, %4 : vector<16x48xf32>
    %cst_5 = arith.constant 0.000000e+00 : f32
    %6 = vector.broadcast %cst_5 : f32 to vector<16x48xf32>
    %7 = arith.maximumf %5, %6 : vector<16x48xf32>
    %c0_6 = arith.constant 0 : index
    %c0_7 = arith.constant 0 : index
    %8 = vector.load %arg4[%c0_6, %c0_7] : memref<16x48xf32, #tpu.memory_space<vmem>>, vector<16x48xf32>
    tpu.vector_store %arg4[%c0_6, %c0_7], %7 {strides = array<i32>} : memref<16x48xf32, #tpu.memory_space<vmem>>, vector<16x48xf32>,
    return
  }
  func.func @transform_0(%arg0: i32) -> (i32, i32) {
    %c0_i32 = arith.constant 0 : i32
    %c0_i32_0 = arith.constant 0 : i32
    return %arg0, %c0_i32 : i32, i32
  }
  func.func @transform_1(%arg0: i32) -> (i32, i32) {
    %c0_i32 = arith.constant 0 : i32
    %c0_i32_0 = arith.constant 0 : i32
    %c0_i32_1 = arith.constant 0 : i32
    return %c0_i32, %c0_i32_0 : i32, i32
  }
  func.func @transform_2(%arg0: i32) -> (i32, i32) {
    %c0_i32 = arith.constant 0 : i32
    %c0_i32_0 = arith.constant 0 : i32
    %c0_i32_1 = arith.constant 0 : i32
    return %c0_i32, %c0_i32_0 : i32, i32
  }
  func.func @transform_3(%arg0: i32) -> (i32, i32) {
    %c0_i32 = arith.constant 0 : i32
    %c0_i32_0 = arith.constant 0 : i32
    return %arg0, %c0_i32 : i32, i32
  }
}

</mosaic_0001>

<bundles_post_ra>
// kernel: tpu_custom_call.1
= control target key start
LH: loop header
LB: loop body
LE: loop exit
PB: predicated region body
PF: predicated region fallthrough
CT: control target
= control target key end

     0   :  { %8 = vsyncpa [#allocation3], 0  ;;  %s561_s0 = inlined_call_operand.vmem [shape: f32[32,64], index: 0, kind: input, shape index: {}]   ;;  %s562_s1 = inlined_call_operand.vmem [shape: f32[64,48], index: 1, kind: input, shape index: {}]   ;;  %s563_s2 = inlined_call_operand.vmem [shape: f32[1,48], index: 2, kind: input, shape index: {}]   ;;  %s564_s3 = inlined_call_operand.hbm [shape: f32[32,48], index: 3, kind: output, shape index: {}]  }
   0x1   :  { %10 = vsyncpa [#allocation3 + $0x1], 0  ;;  %s450_s12 = smov 0   ;;  %s452_s13 = smov 0  }
   0x2   :  { %s454_s14 = smov 0   ;;  %s456_s15 = smov 0  }
   0x3 LB: > { %s471_s16 = sadd.s32 4294967295, %s426_s15   ;;  %s299_s17 = sadd.s32 4294967294, %s426_s15   ;;  %s426_s15 = sphi %s456_s15, %s570_s15   ;;  %s422_s14 = sphi %s454_s14, %s569_s14   ;;  %s418_s13 = sphi %s452_s13, %s568_s13   ;;  %s414_s12 = sphi %s450_s12, %s567_s12  }
   0x4   : > { %s475_s18 = sadd.s32 1, %s426_s15   ;;  %s91_s19 = sadd.s32 1, %s422_s14 }
   0x5   : > { %s88_s20 = ssub.s32 %s426_s15, %s475_s18  ;;  %p101_p0 = scmp.ne.s32.totalorder %s422_s14, %s418_s13 }
   0x6   : > { %p89_p1 = scmp.eq.s32.totalorder %s88_s20, 0  ;;  %p102_p2 = scmp.eq.s32.totalorder %s471_s16, 1 }
   0x7   : > { %p107_p3 = scmp.ne.s32.totalorder %s418_s13, %s414_s12  ;;  %p108_p4 = scmp.eq.s32.totalorder %s299_s17, 1 }
   0x8   : > { %s486_s21 = scalar_select %p89_p1, %s422_s14, %s91_s19  }
   0x9   : > { %p488_p5 = por %p102_p2, %p101_p0  ;;  %p492_p6 = por %p108_p4, %p107_p3 }
   0xa   : > { %p302_p7 = scmp.ge.s32.totalorder %s426_s15, 1  ;;  %p141_p8 = scmp.lt.s32.totalorder %s426_s15, 3 }
   0xc   : > { %p142_p9 = pnand %p302_p7, %p141_p8 }
   0xd   : > { %s304_s28 = sshll.u32 (!%p142_p9), %s471_s16, 1  ;;  %s162_s27 = sand.u32 (!%p142_p9), 1, %s418_s13  }
   0xe   : > { %145 = sbr.rel (%p142_p9) target bundleno = 170 (0xaa), region = 32  ;;  %p166_p10 = scmp.lt.s32.totalorder (!%p142_p9), %s304_s28, 3 }
   0xf   : > { %s313_s29 = sshll.u32 (!%p142_p9), %s471_s16, 4  ;;  %s222_s16 = scalar_lea.sflag (!%p142_p9), [#allocation3], %s162_s27 }
  0x10   : > { %s233_s7 = scalar_lea.hbm (!%p142_p9), %s564_s3, %s313_s29 }
  0x11   : > { %s236_s10 = sshll.u32 (!%p142_p9), %s233_s7, 4  ;;  %s237_s10 = int_to_ptr.hbm [resolvable:$true] %s236_s10 }
  0x12   : > { %s378_s11 = sshra.s32 (!%p142_p9), %s237_s10, 4  ;;  %s379_s11 = int_to_ptr.hbm [resolvable:$true] %s378_s11 }
  0x13   : > { %v181_v0 = vld [vmem:[%s562_s1 + $0x38] sm:$0xff]  ;;  %v180_v1 = vld [vmem:[%s562_s1 + $0x30] sm:$0xff]  ;;  %v179_v2 = vld [vmem:[%s562_s1 + $0x28] sm:$0xff]  ;;  %s572_s28 = smov (!%p166_p10, %s304_s28), 3  ;;  %vm186_vm0 = vcmask 523264   ;;  %vm218_vm1 = vcmask 392192   ;;  %p385_p0 = scmp.lt.s32.totalorder %s379_s11, %s564_s3 }
  0x14   : > { %201 = vmatpush.msra.mxu0 %v181_v0  ;;  %314 = vmatpush.msra.mxu1 %v181_v0  ;;  %v178_v3 = vld [vmem:[%s562_s1 + $0x20] sm:$0xff]  ;;  %v177_v4 = vld [vmem:[%s562_s1 + $0x18] sm:$0xff]  ;;  %s305_s8 = sshll.u32 %s572_s28, 3  ;;  %v176_v5 = vld [vmem:[%s562_s1 + $0x10] sm:$0xff]  ;;  %s303_s28 = sshll.u32 %s162_s27, 4 }
  0x15   : > { %v175_v6 = vld [vmem:[%s562_s1 + $0x8] sm:$0xff]  ;;  %s169_s24 = scalar_lea.vmem %s561_s0, %s305_s8  ;;  %v174_v7 = vld [vmem:[%s562_s1] sm:$0xff]  ;;  %s164_s8 = scalar_lea.vmem [#allocation2], %s303_s28 }
  0x16   : > { %202 = vmatpush.msra.mxu0 %v180_v1  ;;  %315 = vmatpush.msra.mxu1 %v180_v1  ;;  %v172_v8 = vld [vmem:[%s169_s24] sm:$0xff]  ;;  %v173_v9 = vld [vmem:[%s169_s24 + $0x8] sm:$0xff]  ;;  %s234_s9 = sshll.u32 %s164_s8, 4  ;;  %s380_s17 = scalar_lea.hbm %s379_s11, 16  ;;  %s235_s9 = int_to_ptr.vmem [resolvable:$true] %s234_s9 }
  0x17   : > { %v363_v10 = vld [vmem:[%s563_s2] ss:$0 sm:$0xff]  ;;  %p381_p11 = scmp.ne.s32.totalorder %s379_s11, %s380_s17  ;;  %s384_s24 = scalar_lea.hbm %s564_s3, 32 }
  0x18   : > { %203 = vmatpush.msra.mxu0 %v179_v2  ;;  %316 = vmatpush.msra.mxu1 %v179_v2  ;;  %p386_p1 = scmp.lt.s32.totalorder %s384_s24, %s380_s17 }
  0x19   : > { %p382_p12 = pnand %p381_p11, %p488_p5 }
  0x1a   : > { %204 = vmatpush.msra.mxu0 %v178_v3  ;;  %317 = vmatpush.msra.mxu1 %v178_v3  ;;  %p387_p2 = por %p386_p1, %p385_p0 }
  0x1b   : > { %p383_p13 = pneg %p382_p12 }
  0x1c   : > { %205 = vmatpush.msra.mxu0 %v177_v4  ;;  %318 = vmatpush.msra.mxu1 %v177_v4 }
  0x1d   : > { %p388_p3 = pnand %p387_p2, %p383_p13 }
  0x1e   : > { %206 = vmatpush.msra.mxu0 %v176_v5  ;;  %319 = vmatpush.msra.mxu1 %v176_v5 }
  0x20   : > { %207 = vmatpush.msra.mxu0 %v175_v6  ;;  %320 = vmatpush.msra.mxu1 %v175_v6 }
  0x22   : > { %208 = vmatpush.msra.mxu0 %v174_v7  ;;  %321 = vmatpush.msra.mxu1 %v174_v7 }
  0x23   : > { %306 = vmatmul.msk.f32.vlgmr.msra.gmra.mxu0 %vm186_vm0, %v172_v8  ;;  %307 = vmatmul.msk.f32.vlgmr.msra.gmra.mxu1 %vm186_vm0, %v173_v9 }
  0xa0   : > { %v210_v11 = vpop.f32.mrf.mxu0  ;;  %v213_v12 = vpop.f32.mrf.mxu1 }
  0xa1   : > { %v211_v13 = vadd.f32 %v363_v10, %v210_v11  ;;  %v214_v14 = vadd.f32 %v363_v10, %v213_v12 }
  0xa3   : > { %v216_v15 = vmax.f32 %v211_v13, 0.0  ;;  %v217_v16 = vmax.f32 %v214_v14, 0.0 }
  0xa5   : > { %219 = vst.msk [vmem:[%s164_s8] sm:$0xff] %vm218_vm1, %v216_v15 }
  0xa6   : > { %220 = vst.msk [vmem:[%s164_s8 + $0x8] sm:$0xff] %vm218_vm1, %v217_v16 }
  0xa7   : > { %391 = shalt.err (!%p388_p3)
}
  0xa8   : > { %s428_s27 = smov 128   ;;  %s429_s28 = smov 8  }
  0xa9   : > { %322 = dma.vmem_to_hbm [thread:$0]  (%p488_p5), %s235_s9, 256, %s237_s10, %s222_s16, %s428_s27, %s428_s27, %s429_s28  }
  0xaa PF: > { %p328_p4 = scmp.ge.s32.totalorder %s426_s15, 2  ;;  %s251_s29 = sand.u32 1, %s414_s12  }
  0xab   : > { %s252_s30 = scalar_lea.sflag [#allocation3], %s251_s29 }
  0xac   : > { %p325_p7 = pnand %p328_p4, %p492_p6 }
  0xae   : > { %p326_p8 = pneg %p325_p7 }
  0xb0   : > { %409 = dma.done.wait (%p326_p8), %s252_s30, 256  }
  0xb1   : > { %411 = vsyncadd (%p326_p8), %s252_s30, 4294967040  ;;  %p13_p9 = scmp.ge.s32.totalorder %s475_s18, 4   ;;  %s567_s12 = smov %s418_s13 }
  0xb2   : > { %s568_s13 = smov %s422_s14  ;;  %s569_s14 = smov %s486_s21 }
  0xb3   : > { %s570_s15 = smov %s475_s18  ;;  %15 = sbr.rel (!%p13_p9) target bundleno = 3 (0x3), region = 67 }
  0xb8   :  { %258 = vsyncpa [#allocation3], 1 }
  0xb9   :  { %260 = vsyncpa [#allocation3 + $0x1], 1 }

</bundles_post_ra>
